<compile_context>
chip_gen: v6e
topology: v6e:2x2x1
jax: 0.10.0
libtpu: 0.0.40
codegen_flags: <defaults>
</compile_context>

<pallas_src>
import numpy as np
import jax
import jax.numpy as jnp
from jax.experimental import pallas as pl
from jax.experimental.pallas import tpu as pltpu


def _round_up(x, m):
    return (x + m - 1) // m * m


def _cdiv(a, b):
    return (a + b - 1) // b


# --- Per-generation VMEM budgeting (v5e/v6e: 128 MiB phys, v7x: 64 MiB/TC) ---
def _physical_vmem_bytes():
    try:
        info = pltpu.get_tpu_info()
        cap = getattr(info, "vmem_capacity_bytes", None)
        if cap:
            return int(cap)
    except Exception:
        pass
    return 64 << 20            # conservative fallback (v7x per-TC size)


_PHYS_VMEM = _physical_vmem_bytes()
# Explicit scoped-VMEM limit with headroom (v7x -> 48 MiB, v5e/v6e -> 96 MiB).
_VMEM_LIMIT_BYTES = int(min(_PHYS_VMEM * 3 // 4, 112 << 20))
# pb tile byte target: 2 double-buffered pb tiles + ~3 tile-sized elementwise
# intermediates (iota / mask / f32 upcast) must stay under the scoped limit.
_TILE_TARGET_BYTES = int(max(2 << 20, _VMEM_LIMIT_BYTES // 6))
# Keep >= this many grid steps when the batch allows it (v7x megacore split
# + pipeline overlap).
_MIN_TILES = 4


def _departure_partial_kernel(lim_ref, radj_ref, pb_ref, out_ref):
    """One batch tile -> one lane-broadcast partial sum.

    partial = -sum_i radj[i] * sum_{j < lim[i]} pb[i, j]
    """
    lim = lim_ref[...]                                   # (TB, 1) i32
    radj = radj_ref[...]                                 # (TB, 1) f32
    pb = pb_ref[...]                                     # (TB, S) f32 / bf16
    TB, S = pb.shape

    j_idx = jax.lax.broadcasted_iota(jnp.int32, (TB, S), 1)
    masked = jnp.where(j_idx < lim, pb, jnp.zeros((), pb.dtype))
    row = jnp.sum(masked.astype(jnp.float32), axis=1, keepdims=True)  # (TB, 1)
    partial = -jnp.sum(radj * row)                       # scalar f32

    out_ref[...] = jnp.full(out_ref.shape, partial, dtype=out_ref.dtype)


def _choose_tile_rows(B, S, itemsize, align):
    """Rows of pb per grid step (sublane-aligned, byte-budgeted, >=4 tiles)."""
    if B <= align:
        return B                                         # one block == full batch dim
    rows = (_TILE_TARGET_BYTES // max(1, S * itemsize)) // align * align
    rows = max(align, rows)
    rows_cap = max(align, _round_up(_cdiv(B, _MIN_TILES), align))
    rows = min(rows, rows_cap)
    return B if rows >= B else rows


def departure_loss_pallas(pb, golden_out, departure_out, stc_length_out, bl):
    """Returns (loss, mean(rewards_z1)) exactly as the PyTorch forward (given bl)."""
    pb = jnp.asarray(pb)
    if pb.dtype not in (jnp.bfloat16, jnp.float32):
        pb = pb.astype(jnp.float32)
    # NOTE: to stream pb as bf16 (~2x on the HBM-bound generations), the
    # producer should emit bf16; casting here would add an extra HBM pass.
    B, S = pb.shape

    golden = jnp.asarray(golden_out, jnp.int32).reshape(-1)     # (L,)
    dep = jnp.asarray(departure_out, jnp.int32).reshape(-1)     # (L,)
    lens = jnp.asarray(stc_length_out, jnp.int32).reshape(B)    # (B,)
    bl = jnp.asarray(bl, jnp.float32)
    L = golden.shape[0]
    # NOTE: if L < max(lens) only the first L positions are counted — same as
    # the reference's golden[:len] slice semantics.

    # --- Cheap O(B*L)/O(B) pre-compute in XLA (hoisted out of the kernel) ----
    t = jnp.arange(L, dtype=jnp.int32)
    hit = jnp.logical_and(t[None, :] < lens[:, None], (golden != dep)[None, :])
    rewards_z1 = jnp.sum(hit, axis=1).astype(jnp.float32)       # (B,)
    avg_rz1 = jnp.mean(rewards_z1)
    lim = jnp.clip(lens + 1, 0, S).astype(jnp.int32)            # (B,) wgt window end
    cnt3 = jnp.sum(lim).astype(jnp.float32)                     # NOTE: 0 if all rows empty (div-by-0, same as reference)
    radj = rewards_z1 * jnp.float32(0.001) - bl                 # rewards - bl

    # --- Batch tiling: pb is streamed, never padded/copied -------------------
    align = 16 if pb.dtype == jnp.bfloat16 else 8
    itemsize = jnp.dtype(pb.dtype).itemsize
    TB = _choose_tile_rows(B, S, itemsize, align)
    num_tiles = _cdiv(B, TB)
    B_pad = num_tiles * TB
    if B_pad != B:
        # Only the tiny per-row side inputs are padded; padded rows get
        # lim = 0 / radj = 0, so the OOB rows of pb's last tile contribute 0.
        lim = jnp.pad(lim, (0, B_pad - B))
        radj = jnp.pad(radj, (0, B_pad - B))
    lim2 = lim.reshape(B_pad, 1)
    radj2 = radj.reshape(B_pad, 1)

    grid_spec = pltpu.PrefetchScalarGridSpec(
        num_scalar_prefetch=0,
        grid=(num_tiles,),
        in_specs=[
            pl.BlockSpec((TB, 1), lambda i: (i, 0)),     # lim  (wgt window end)
            pl.BlockSpec((TB, 1), lambda i: (i, 0)),     # rewards - bl
            pl.BlockSpec((TB, S), lambda i: (i, 0)),     # pb (streamed over batch)
        ],
        out_specs=pl.BlockSpec((1, 1, 128), lambda i: (i, 0, 0)),
    )

    parts = pl.pallas_call(
        _departure_partial_kernel,
        out_shape=jax.ShapeDtypeStruct((num_tiles, 1, 128), jnp.float32),
        grid_spec=grid_spec,
        compiler_params=pltpu.CompilerParams(
            dimension_semantics=("parallel",),
            vmem_limit_bytes=_VMEM_LIMIT_BYTES),
    )(lim2, radj2, pb)

    # ls3 = sum_i (rewards_i - bl) * sum_{j < lim_i} -pb[i, j];  loss = ls3 / cnt3
    loss = jnp.sum(parts[:, 0, 0]) / cnt3
    return loss, avg_rz1


_departure_loss_jit = jax.jit(departure_loss_pallas)


class DepartureLossRLPallas:
    """Stateful wrapper mirroring departureLossRL.forward.

    The running baseline `bl` stays a device scalar (no per-step host sync);
    the step counter `bn` is a host integer.
    """
    # TODO(synk): write_text is host file I/O unrelated to forward; not ported.

    def __init__(self):
        self.bl = jnp.asarray(0.0, jnp.float32)
        self.bn = 0

    def forward(self, sel, pb, golden_out, mask_id, stc_length_out,
                departure_out_list):
        del sel, mask_id  # sel only supplies pb's shape; mask_id is unused
        loss, avg_rz1 = _departure_loss_jit(
            pb, golden_out, departure_out_list, stc_length_out, self.bl)
        # Device-side baseline update (rewards = rewards_z1 * 0.001).
        rewards_ave3 = avg_rz1 * jnp.float32(0.001)
        self.bl = (self.bl * self.bn + rewards_ave3) / (self.bn + 1)
        self.bn += 1
        return loss, avg_rz1, None


def _reference_forward(pb, golden, dep, lens, bl):
    """Pure numpy re-implementation of the PyTorch forward (for verification)."""
    pb = np.asarray(pb, np.float32)
    batch, S = pb.shape
    rewards_z1 = np.asarray(
        [np.sum(np.asarray(golden[:lens[i]]) != np.asarray(dep[:lens[i]]))
         for i in range(batch)])
    rewards = rewards_z1 * 0.001
    ls3 = 0.0
    cnt3 = 0
    for j in range(S):
        wgt = np.asarray([1 if j < min(lens[i] + 1, S) else 0
                          for i in range(batch)])
        ls3 += np.sum(-pb[:, j] * (rewards - bl) * wgt.astype(float))
        cnt3 += np.sum(wgt)
    ls3 /= cnt3
    return float(ls3), float(np.average(rewards_z1))


def _check(pb, golden, dep, lens, rtol, atol):
    module = DepartureLossRLPallas()
    sel = jnp.zeros(pb.shape, jnp.int32)
    loss, avg_rz1, _ = module.forward(sel, pb, golden, 0, lens, dep)
    loss = jax.block_until_ready(loss)
    avg_rz1 = jax.block_until_ready(avg_rz1)
    jax.block_until_ready(module.bl)

    ref_loss, ref_avg = _reference_forward(
        np.asarray(pb).astype(np.float32), np.asarray(golden),
        np.asarray(dep), np.asarray(lens), bl=0.0)
    np.testing.assert_allclose(float(loss), ref_loss, rtol=rtol, atol=atol)
    np.testing.assert_allclose(float(avg_rz1), ref_avg, rtol=1e-6, atol=1e-6)

    # Device-side baseline update matches the reference update.
    ref_bl = (0.0 * 0 + ref_avg * 0.001) / 1
    np.testing.assert_allclose(float(module.bl), ref_bl, rtol=1e-5, atol=1e-7)


if __name__ == "__main__":
    vocab_size = 10
    key = jax.random.PRNGKey(0)

    # --- Test 1: tiny shapes consistent with the module's forward -----------
    batch, seq = 2, 8
    k1, k2, k3, k4 = jax.random.split(key, 4)
    pb = jax.random.normal(k2, (batch, seq), dtype=jnp.float32)        # log-probs
    golden_out = jax.random.randint(k3, (seq,), 0, vocab_size, dtype=jnp.int32)
    departure_out = jax.random.randint(k4, (seq,), 0, vocab_size, dtype=jnp.int32)
    stc_length_out = np.array([5, 7], dtype=np.int32)
    _check(pb, golden_out, departure_out, stc_length_out, rtol=1e-5, atol=1e-6)

    # --- Test 2: multi-tile grid with B not divisible by the tile (f32) -----
    batch, seq = 20, 160
    k1, k2, k3, k4 = jax.random.split(jax.random.PRNGKey(1), 4)
    pb = jax.random.normal(k2, (batch, seq), dtype=jnp.float32)
    golden_out = jax.random.randint(k3, (seq,), 0, vocab_size, dtype=jnp.int32)
    departure_out = jax.random.randint(k4, (seq,), 0, vocab_size, dtype=jnp.int32)
    stc_length_out = np.asarray(
        jax.random.randint(k1, (batch,), 0, seq + 1, dtype=jnp.int32))
    _check(pb, golden_out, departure_out, stc_length_out, rtol=5e-4, atol=1e-5)

    # --- Test 3: bf16 streaming path (producer-provided bf16 pb) ------------
    batch, seq = 36, 256
    k1, k2, k3, k4 = jax.random.split(jax.random.PRNGKey(2), 4)
    pb = jax.random.normal(k2, (batch, seq), dtype=jnp.float32).astype(jnp.bfloat16)
    golden_out = jax.random.randint(k3, (seq,), 0, vocab_size, dtype=jnp.int32)
    departure_out = jax.random.randint(k4, (seq,), 0, vocab_size, dtype=jnp.int32)
    stc_length_out = np.asarray(
        jax.random.randint(k1, (batch,), 0, seq + 1, dtype=jnp.int32))
    _check(pb, golden_out, departure_out, stc_length_out, rtol=5e-4, atol=1e-5)

    print("KERNEL_OK")
</pallas_src>

<mosaic_0001>
module attributes {stable_mosaic.version = 11 : i64} {
  func.func @_departure_partial_kernel(%arg0: i32, %arg1: memref<2x1xi32, #tpu.memory_space<vmem>>, %arg2: memref<2x1xf32, #tpu.memory_space<vmem>>, %arg3: memref<2x8xf32, #tpu.memory_space<vmem>>, %arg4: memref<1x1x128xf32, #tpu.memory_space<vmem>>) attributes {dimension_semantics = [#tpu.dimension_semantics<parallel>], iteration_bounds = array<i64: 1>, scalar_prefetch = 0 : i64, scratch_operands = 0 : i64, tpu.core_type = #tpu.core_type<tc>, window_params = [{transform_indices = @transform_0, window_bounds = array<i64: 2, 1>}, {transform_indices = @transform_1, window_bounds = array<i64: 2, 1>}, {transform_indices = @transform_2, window_bounds = array<i64: 2, 8>}, {transform_indices = @transform_3, window_bounds = array<i64: 1, 1, 128>}]} {
    %c0 = arith.constant 0 : index
    %c0_0 = arith.constant 0 : index
    %0 = vector.load %arg1[%c0, %c0_0] : memref<2x1xi32, #tpu.memory_space<vmem>>, vector<2x1xi32>
    %c0_1 = arith.constant 0 : index
    %c0_2 = arith.constant 0 : index
    %1 = vector.load %arg2[%c0_1, %c0_2] : memref<2x1xf32, #tpu.memory_space<vmem>>, vector<2x1xf32>
    %c0_3 = arith.constant 0 : index
    %c0_4 = arith.constant 0 : index
    %2 = vector.load %arg3[%c0_3, %c0_4] : memref<2x8xf32, #tpu.memory_space<vmem>>, vector<2x8xf32>
    %3 = tpu.iota {dimensions = array<i32: 1>} : vector<2x8xi32>
    %4 = vector.broadcast %0 : vector<2x1xi32> to vector<2x8xi32>
    %5 = arith.cmpi slt, %3, %4 : vector<2x8xi32>
    %cst = arith.constant 0.000000e+00 : f32
    %6 = vector.broadcast %cst : f32 to vector<2x8xf32>
    %7 = arith.select %5, %2, %6 : vector<2x8xi1>, vector<2x8xf32>
    %cst_5 = arith.constant dense<0.000000e+00> : vector<2xf32>
    %8 = vector.multi_reduction <add>, %7, %cst_5 [1] : vector<2x8xf32> to vector<2xf32>
    %9 = vector.shape_cast %8 : vector<2xf32> to vector<2x1xf32>
    %10 = arith.mulf %1, %9 : vector<2x1xf32>
    %11 = vector.shape_cast %10 : vector<2x1xf32> to vector<1x2x1xf32>
    %cst_6 = arith.constant dense<0.000000e+00> : vector<1xf32>
    %12 = vector.multi_reduction <add>, %11, %cst_6 [1, 2] : vector<1x2x1xf32> to vector<1xf32>
    %13 = vector.shape_cast %12 : vector<1xf32> to vector<1x1x1xf32>
    %14 = vector.extract %13[0, 0, 0] : f32 from vector<1x1x1xf32>
    %cst_7 = arith.constant 0.000000e+00 : f32
    %15 = arith.subf %cst_7, %14 : f32
    %16 = vector.broadcast %15 : f32 to vector<1x1x128xf32>
    %c0_8 = arith.constant 0 : index
    %c0_9 = arith.constant 0 : index
    %c0_10 = arith.constant 0 : index
    %17 = vector.load %arg4[%c0_8, %c0_9, %c0_10] : memref<1x1x128xf32, #tpu.memory_space<vmem>>, vector<1x1x128xf32>
    tpu.vector_store %arg4[%c0_8, %c0_9, %c0_10], %16 {strides = array<i32>} : memref<1x1x128xf32, #tpu.memory_space<vmem>>, vector<1x1x128xf32>,
    return
  }
  func.func @transform_0(%arg0: i32) -> (i32, i32) {
    %c0_i32 = arith.constant 0 : i32
    %c0_i32_0 = arith.constant 0 : i32
    return %arg0, %c0_i32 : i32, i32
  }
  func.func @transform_1(%arg0: i32) -> (i32, i32) {
    %c0_i32 = arith.constant 0 : i32
    %c0_i32_0 = arith.constant 0 : i32
    return %arg0, %c0_i32 : i32, i32
  }
  func.func @transform_2(%arg0: i32) -> (i32, i32) {
    %c0_i32 = arith.constant 0 : i32
    %c0_i32_0 = arith.constant 0 : i32
    return %arg0, %c0_i32 : i32, i32
  }
  func.func @transform_3(%arg0: i32) -> (i32, i32, i32) {
    %c0_i32 = arith.constant 0 : i32
    %c0_i32_0 = arith.constant 0 : i32
    %c0_i32_1 = arith.constant 0 : i32
    return %arg0, %c0_i32, %c0_i32_0 : i32, i32, i32
  }
}

</mosaic_0001>

<bundles_post_ra>
// kernel: ne.1
= control target key start
LH: loop header
LB: loop body
LE: loop exit
PB: predicated region body
PF: predicated region fallthrough
CT: control target
= control target key end

     0   :  { %v16_v2 = vmov 0   ;;  %s41_s0 = inlined_call_operand.vmem [shape: s32[8], index: 0, kind: input, shape index: {}]   ;;  %s42_s1 = inlined_call_operand.vmem [shape: s32[8], index: 1, kind: input, shape index: {}]   ;;  %s43_s2 = inlined_call_operand.vmem [shape: pred[8], index: 2, kind: output, shape index: {}]  }
   0x1   :  { %v3_v0 = vld [vmem:[%s41_s0] sm:$0x1] }
   0x2   :  { %v4_v1 = vld [vmem:[%s42_s1] sm:$0x1] }
   0x3   :  { %vm7_vm0 = vcmp.ne.s32.totalorder %v3_v0, %v4_v1 }
   0x4   :  { %v8_v3 = vsel %vm7_vm0, 1, %v16_v2 }
   0x5   :  { %v10_v4 = vpack.c.b16 %v16_v2, %v8_v3 }
   0x7   :  { %v11_v5 = vpack.c.b8 %v16_v2, %v10_v4 }
   0x9   :  { %14 = vst [vmem:[%s43_s2] sm:$0x1] %v11_v5 }

// kernel: departure_loss_pallas.1
= control target key start
LH: loop header
LB: loop body
LE: loop exit
PB: predicated region body
PF: predicated region fallthrough
CT: control target
= control target key end

     0   :  { %v51_v0 = vmov 0   ;;  %v17_v2 = vlaneseq  ;;  %vm24_vm0 = vcmask 58368   ;;  %vm29_vm2 = vcmask 1024   ;;  %s84_s0 = inlined_call_operand.vmem [shape: s32[2,1], index: 0, kind: input, shape index: {}]   ;;  %s85_s2 = inlined_call_operand.vmem [shape: f32[2,8], index: 2, kind: input, shape index: {}]   ;;  %s86_s1 = inlined_call_operand.vmem [shape: f32[2,1], index: 1, kind: input, shape index: {}]   ;;  %s87_s3 = inlined_call_operand.vmem [shape: f32[1,1,128], index: 3, kind: output, shape index: {}]  }
   0x1   :  { %50 = vset.pattern.permute.xlu0 %v51_v0  ;;  %v14_v1 = vld [vmem:[%s84_s0] sm:$0x3] }
   0x2   :  { %20 = vperm.xlu0 %50, %v14_v1   ;;  %v18_v3 = vand.u32 127, %v17_v2  ;;  %v16_v4 = vld [vmem:[%s85_s2] sm:$0x3] }
   0x3   :  { %v15_v8 = vld [vmem:[%s86_s1] sm:$0x3] }
  0x7d   :  { %v21_v5 = vpop.permute.xlu0 %20 }
  0x7e   :  { %vm22_vm1 = vcmp.lt.s32.totalorder %v18_v3, %v21_v5 }
  0x7f   :  { %v23_v6 = vsel %vm22_vm1, %v16_v4, 0.0 }
  0x80   :  { %v25_v7 = vsel %vm24_vm0, %v23_v6, 0.0 }
  0x81   :  { %26 = vadd.xlane.f32.xlu0 %v25_v7 }
 0x10a   :  { %v27_v9 = vpop.xlane.xlu0 %26 }
 0x10b   :  { %v28_v10 = vmul.f32 %v27_v9, %v15_v8 }
 0x10d   :  { %v30_v11 = vsel %vm29_vm2, %v28_v10, 0.0 }
 0x10e   :  { %31 = vadd.xlane.f32.xlu1 %v30_v11 }
 0x197   :  { %v32_v12 = vpop.xlane.xlu1 %31 }
 0x198   :  { %v33_v13 = vrot.slane %v32_v12, 4 }
 0x19a   :  { %v34_v14 = vadd.f32 %v33_v13, %v32_v12 }
 0x19c   :  { %v35_v15 = vrot.slane %v34_v14, 2 }
 0x19e   :  { %v36_v16 = vadd.f32 %v35_v15, %v34_v14 }
 0x1a0   :  { %v37_v17 = vrot.slane %v36_v16, 1 }
 0x1a2   :  { %v38_v18 = vadd.f32 %v37_v17, %v36_v16 }
 0x1a4   :  { %47 = vpush %v38_v18 }
 0x1d5   :  { %s48_s0 = spop %47 }
 0x1d6   :  { %s40_s2 = ssub.f32 0.0, %s48_s0 }
 0x1d8   :  { %v41_v19 = vstv %s40_s2 }
 0x1d9   :  { %42 = vst [vmem:[%s87_s3] sm:$0x1] %v41_v19 }

</bundles_post_ra>
